<compile_context>
chip_gen: v5e
topology: v5e:2x2
jax: 0.10.0
libtpu: 0.0.40
codegen_flags: <defaults>
</compile_context>

<pallas_src>
import math
import jax
import jax.numpy as jnp
from jax.experimental import pallas as pl
from jax.experimental.pallas import tpu as pltpu


def _round_up(x, m):
    return ((x + m - 1) // m) * m


def _gelu_exact(x):
    # PyTorch nn.GELU() default is the exact erf-based GELU (f32, VPU/EUP).
    return 0.5 * x * (1.0 + jax.lax.erf(x * (1.0 / math.sqrt(2.0))))


def _ffn_kernel(x_ref, w1_ref, b1_ref, w2_ref, b2_ref, o_ref):
    # x_ref:  (tm, Cp)  f32   row tile (resident across the hidden axis)
    # w1_ref: (Cp, tn)  bf16  hidden tile n of W1
    # b1_ref: (1, tn)   f32   hidden tile n of b1
    # w2_ref: (tn, Cp)  bf16  hidden tile n of W2
    # b2_ref: (1, Cp)   f32
    # o_ref:  (tm, Cp)  f32   output row tile == reduction accumulator
    n = pl.program_id(1)

    @pl.when(n == 0)
    def _():
        o_ref[...] = jnp.zeros_like(o_ref)

    # First matmul: bf16 in, f32 MXU accumulation; bias + GELU stay in f32.
    xb = x_ref[...].astype(jnp.bfloat16)
    h = jnp.dot(xb, w1_ref[...], preferred_element_type=jnp.float32)
    h = _gelu_exact(h + b1_ref[...])

    # Second matmul: partial contraction over this hidden tile, accumulated
    # directly in the resident f32 output block.
    o_ref[...] += jnp.dot(h.astype(jnp.bfloat16), w2_ref[...],
                          preferred_element_type=jnp.float32)

    @pl.when(n == pl.num_programs(1) - 1)
    def _():
        o_ref[...] += b2_ref[...]


def prepare_ffn_params(w1, b1, w2, b2):
    """One-time weight preprocessing (bf16 cast + lane-dense zero padding).

    Hoisted out of feed_forward so the cast/pad HBM traffic is paid once at
    init, not on every forward call.
    """
    C, H = w1.shape
    Cp = _round_up(C, 128)
    Hp = _round_up(H, 128)
    w1p = jnp.pad(w1.astype(jnp.bfloat16), ((0, Cp - C), (0, Hp - H)))
    b1p = jnp.pad(b1.astype(jnp.float32).reshape(1, H), ((0, 0), (0, Hp - H)))
    w2p = jnp.pad(w2.astype(jnp.bfloat16), ((0, Hp - H), (0, Cp - C)))
    b2p = jnp.pad(b2.astype(jnp.float32).reshape(1, C), ((0, 0), (0, Cp - C)))
    return {"w1": w1p, "b1": b1p, "w2": w2p, "b2": b2p,
            "C": C, "H": H, "Cp": Cp, "Hp": Hp}


def _vmem_capacity_bytes():
    try:
        info = pltpu.get_tpu_info()
        cap = getattr(info, "vmem_capacity_bytes", None)
        if cap:
            return int(cap)
    except Exception:
        pass
    return 64 * 1024 * 1024  # conservative fallback (v7x per-TC VMEM)


def _vmem_tile_bytes(tm, tn, Cp):
    """Estimated VMEM footprint of the auto-pipelined (double-buffered) tiles."""
    x_bufs = 2 * tm * Cp * 4          # f32 x row tile
    w1_bufs = 2 * Cp * tn * 2         # bf16 W1 tile
    w2_bufs = 2 * tn * Cp * 2         # bf16 W2 tile
    out_bufs = 2 * tm * Cp * 4        # f32 output/accumulator tile
    bias = 2 * 8 * (tn + Cp) * 4      # (1, n) f32 blocks pad to 8 sublanes
    return x_bufs + w1_bufs + w2_bufs + out_bufs + bias


def _select_tiles(M, Cp, Hp, vmem_cap):
    """VMEM-aware tile selection (v5e/v6e: 128 MiB, v7x: 64 MiB).

    Prefer the largest row tile tm that fits (cuts weight re-streaming), then
    the largest hidden tile tn (cuts reduction steps / accumulator RMW).
    """
    vmem_limit = min(int(vmem_cap * 0.85), vmem_cap - (8 << 20))
    budget = vmem_limit - (6 << 20)   # headroom for compiler-internal scratch

    tn_cands = [t for t in (1024, 512, 256, 128) if t <= Hp and Hp % t == 0]
    if not tn_cands:
        tn_cands = [Hp]

    tm, tn = 16, tn_cands[-1]
    for tm_c in (512, 384, 256, 128, 64, 32, 16):
        fit = next((tn_c for tn_c in tn_cands
                    if _vmem_tile_bytes(tm_c, tn_c, Cp) <= budget), None)
        if fit is not None:
            tm, tn = tm_c, fit
            break

    # 16-aligned row tiling; when M allows, keep >=2 row tiles so the
    # "parallel" axis can shard across both v7x TensorCores.
    tm = min(tm, _round_up(M, 16))
    if M <= tm and M >= 32:
        tm = _round_up(-(-M // 2), 16)

    return tm, tn, vmem_limit


def feed_forward(x, params, *, tm=None, tn=None):
    """x: [B, T, C] float32; params from prepare_ffn_params. Returns [B, T, C]."""
    B, T, C = x.shape
    assert C == params["C"], "x feature dim does not match prepared weights"
    Cp, Hp = params["Cp"], params["Hp"]
    M = B * T

    sel_tm, sel_tn, vmem_limit = _select_tiles(M, Cp, Hp, _vmem_capacity_bytes())
    tm = sel_tm if tm is None else tm
    tn = sel_tn if tn is None else tn
    Mp = _round_up(M, tm)

    # x stays f32 (cast to bf16 inside the kernel); pad only when misaligned.
    x2d = x.reshape(M, C).astype(jnp.float32)
    if (Mp, Cp) != (M, C):
        x2d = jnp.pad(x2d, ((0, Mp - M), (0, Cp - C)))

    n_row_tiles = Mp // tm
    cost = pl.CostEstimate(
        flops=4 * Mp * Cp * Hp,                     # two matmuls, 2*M*C*H each
        transcendentals=Mp * Hp,                    # GELU erf
        bytes_accessed=(Mp * Cp * 4                 # x read (f32)
                        + Mp * Cp * 4               # output write (f32)
                        + n_row_tiles * (2 * Cp * Hp * 2   # W1+W2 re-streamed per row tile
                                         + Hp * 4 + Cp * 4)),
    )

    out = pl.pallas_call(
        _ffn_kernel,
        out_shape=jax.ShapeDtypeStruct((Mp, Cp), jnp.float32),
        grid_spec=pltpu.PrefetchScalarGridSpec(
            num_scalar_prefetch=0,
            grid=(Mp // tm, Hp // tn),
            in_specs=[
                pl.BlockSpec((tm, Cp), lambda i, n: (i, 0)),   # x rows
                pl.BlockSpec((Cp, tn), lambda i, n: (0, n)),   # W1 hidden tile
                pl.BlockSpec((1, tn), lambda i, n: (0, n)),    # b1 hidden tile
                pl.BlockSpec((tn, Cp), lambda i, n: (n, 0)),   # W2 hidden tile
                pl.BlockSpec((1, Cp), lambda i, n: (0, 0)),    # b2
            ],
            out_specs=pl.BlockSpec((tm, Cp), lambda i, n: (i, 0)),
        ),
        compiler_params=pltpu.CompilerParams(
            dimension_semantics=("parallel", "arbitrary"),
            vmem_limit_bytes=vmem_limit,
        ),
        cost_estimate=cost,
    )(x2d, params["w1"], params["b1"], params["w2"], params["b2"])

    return out[:M, :C].astype(x.dtype).reshape(B, T, C)


def init_params(key, n_embd):
    """Deterministic init mimicking nn.Linear's U(-1/sqrt(fan_in), 1/sqrt(fan_in))."""
    hidden = 4 * n_embd
    k1, k2, k3, k4 = jax.random.split(key, 4)
    lim1 = 1.0 / math.sqrt(n_embd)
    lim2 = 1.0 / math.sqrt(hidden)
    w1 = jax.random.uniform(k1, (n_embd, hidden), jnp.float32, -lim1, lim1)
    b1 = jax.random.uniform(k2, (hidden,), jnp.float32, -lim1, lim1)
    w2 = jax.random.uniform(k3, (hidden, n_embd), jnp.float32, -lim2, lim2)
    b2 = jax.random.uniform(k4, (n_embd,), jnp.float32, -lim2, lim2)
    return w1, b1, w2, b2


if __name__ == "__main__":
    key = jax.random.PRNGKey(0)
    kx, kp = jax.random.split(key)

    B, T, n_embd = 2, 8, 32          # batch=2, seq=8, n_embd=32 (hidden = 128)
    dropout_rate = 0.1               # identity at inference

    x = jax.random.normal(kx, (B, T, n_embd), dtype=jnp.float32)
    w1, b1, w2, b2 = init_params(kp, n_embd)

    params = prepare_ffn_params(w1, b1, w2, b2)   # one-time weight cast/pad
    out = feed_forward(x, params)
    out = jax.block_until_ready(out)

    # Reference in plain JAX, mirroring the kernel's bf16-matmul / f32-accum numerics.
    xb = x.reshape(-1, n_embd).astype(jnp.bfloat16)
    h_ref = jnp.dot(xb, w1.astype(jnp.bfloat16),
                    preferred_element_type=jnp.float32) + b1
    h_ref = 0.5 * h_ref * (1.0 + jax.lax.erf(h_ref / math.sqrt(2.0)))
    y_ref = jnp.dot(h_ref.astype(jnp.bfloat16), w2.astype(jnp.bfloat16),
                    preferred_element_type=jnp.float32) + b2
    y_ref = y_ref.reshape(B, T, n_embd)

    assert jnp.allclose(out, y_ref, atol=1e-2, rtol=1e-2), "mismatch vs reference"

    print("KERNEL_OK")
</pallas_src>

<mosaic_0001>
module attributes {stable_mosaic.version = 11 : i64} {
  func.func @_ffn_kernel(%arg0: i32, %arg1: i32, %arg2: memref<16x128xf32, #tpu.memory_space<vmem>>, %arg3: memref<128x128xbf16, #tpu.memory_space<vmem>>, %arg4: memref<1x128xf32, #tpu.memory_space<vmem>>, %arg5: memref<128x128xbf16, #tpu.memory_space<vmem>>, %arg6: memref<1x128xf32, #tpu.memory_space<vmem>>, %arg7: memref<16x128xf32, #tpu.memory_space<vmem>>) attributes {dimension_semantics = [#tpu.dimension_semantics<parallel>, #tpu.dimension_semantics<arbitrary>], iteration_bounds = array<i64: 1, 1>, scalar_prefetch = 0 : i64, scratch_operands = 0 : i64, tpu.core_type = #tpu.core_type<tc>, window_params = [{transform_indices = @transform_0, window_bounds = array<i64: 16, 128>}, {transform_indices = @transform_1, window_bounds = array<i64: 128, 128>}, {transform_indices = @transform_2, window_bounds = array<i64: 1, 128>}, {transform_indices = @transform_3, window_bounds = array<i64: 128, 128>}, {pipeline_mode = #tpu.pipeline_mode<synchronous>, transform_indices = @transform_4, window_bounds = array<i64: 1, 128>}, {transform_indices = @transform_5, window_bounds = array<i64: 16, 128>}]} {
    %c0_i32 = arith.constant 0 : i32
    %0 = arith.cmpi eq, %arg1, %c0_i32 : i32
    %1 = arith.extui %0 : i1 to i32
    %c0_i32_0 = arith.constant 0 : i32
    %2 = arith.cmpi ne, %1, %c0_i32_0 : i32
    scf.if %2 {
      %cst_18 = arith.constant 0.000000e+00 : f32
      %27 = vector.broadcast %cst_18 : f32 to vector<16x128xf32>
      %c0_19 = arith.constant 0 : index
      %c0_20 = arith.constant 0 : index
      %28 = vector.load %arg7[%c0_19, %c0_20] : memref<16x128xf32, #tpu.memory_space<vmem>>, vector<16x128xf32>
      tpu.vector_store %arg7[%c0_19, %c0_20], %27 {strides = array<i32>} : memref<16x128xf32, #tpu.memory_space<vmem>>, vector<16x128xf32>,
    } else {
    }
    %c0 = arith.constant 0 : index
    %c0_1 = arith.constant 0 : index
    %3 = vector.load %arg2[%c0, %c0_1] : memref<16x128xf32, #tpu.memory_space<vmem>>, vector<16x128xf32>
    %4 = arith.truncf %3 : vector<16x128xf32> to vector<16x128xbf16>
    %c0_2 = arith.constant 0 : index
    %c0_3 = arith.constant 0 : index
    %5 = vector.load %arg3[%c0_2, %c0_3] : memref<128x128xbf16, #tpu.memory_space<vmem>>, vector<128x128xbf16>
    %cst = arith.constant dense<0.000000e+00> : vector<16x128xf32>
    %6 = tpu.matmul %4, %5, %cst {dimension_numbers = #tpu.dot_dimension_numbers<[1], [0], [0], [1], [0, 0, 1, 1], [], []>} : vector<16x128xbf16>, vector<128x128xbf16>, vector<16x128xf32> -> vector<16x128xf32>
    %c0_4 = arith.constant 0 : index
    %c0_5 = arith.constant 0 : index
    %7 = vector.load %arg4[%c0_4, %c0_5] : memref<1x128xf32, #tpu.memory_space<vmem>>, vector<1x128xf32>
    %8 = vector.broadcast %7 : vector<1x128xf32> to vector<16x128xf32>
    %9 = arith.addf %6, %8 : vector<16x128xf32>
    %cst_6 = arith.constant 5.000000e-01 : f32
    %10 = vector.broadcast %cst_6 : f32 to vector<16x128xf32>
    %11 = arith.mulf %10, %9 : vector<16x128xf32>
    %cst_7 = arith.constant 0.707106769 : f32
    %12 = vector.broadcast %cst_7 : f32 to vector<16x128xf32>
    %13 = arith.mulf %9, %12 : vector<16x128xf32>
    %14 = math.erf %13 : vector<16x128xf32>
    %cst_8 = arith.constant 1.000000e+00 : f32
    %15 = vector.broadcast %cst_8 : f32 to vector<16x128xf32>
    %16 = arith.addf %15, %14 : vector<16x128xf32>
    %17 = arith.mulf %11, %16 : vector<16x128xf32>
    %c0_9 = arith.constant 0 : index
    %c0_10 = arith.constant 0 : index
    %18 = vector.load %arg7[%c0_9, %c0_10] : memref<16x128xf32, #tpu.memory_space<vmem>>, vector<16x128xf32>
    %19 = arith.truncf %17 : vector<16x128xf32> to vector<16x128xbf16>
    %c0_11 = arith.constant 0 : index
    %c0_12 = arith.constant 0 : index
    %20 = vector.load %arg5[%c0_11, %c0_12] : memref<128x128xbf16, #tpu.memory_space<vmem>>, vector<128x128xbf16>
    %cst_13 = arith.constant dense<0.000000e+00> : vector<16x128xf32>
    %21 = tpu.matmul %19, %20, %cst_13 {dimension_numbers = #tpu.dot_dimension_numbers<[1], [0], [0], [1], [0, 0, 1, 1], [], []>} : vector<16x128xbf16>, vector<128x128xbf16>, vector<16x128xf32> -> vector<16x128xf32>
    %22 = arith.addf %18, %21 : vector<16x128xf32>
    %c0_14 = arith.constant 0 : index
    %c0_15 = arith.constant 0 : index
    %23 = vector.load %arg7[%c0_14, %c0_15] : memref<16x128xf32, #tpu.memory_space<vmem>>, vector<16x128xf32>
    tpu.vector_store %arg7[%c0_14, %c0_15], %22 {strides = array<i32>} : memref<16x128xf32, #tpu.memory_space<vmem>>, vector<16x128xf32>,
    %c0_i32_16 = arith.constant 0 : i32
    %24 = arith.cmpi eq, %arg1, %c0_i32_16 : i32
    %25 = arith.extui %24 : i1 to i32
    %c0_i32_17 = arith.constant 0 : i32
    %26 = arith.cmpi ne, %25, %c0_i32_17 : i32
    scf.if %26 {
      %c0_18 = arith.constant 0 : index
      %c0_19 = arith.constant 0 : index
      %27 = vector.load %arg7[%c0_18, %c0_19] : memref<16x128xf32, #tpu.memory_space<vmem>>, vector<16x128xf32>
      %c0_20 = arith.constant 0 : index
      %c0_21 = arith.constant 0 : index
      %28 = vector.load %arg6[%c0_20, %c0_21] : memref<1x128xf32, #tpu.memory_space<vmem>>, vector<1x128xf32>
      %29 = vector.broadcast %28 : vector<1x128xf32> to vector<16x128xf32>
      %30 = arith.addf %27, %29 : vector<16x128xf32>
      %c0_22 = arith.constant 0 : index
      %c0_23 = arith.constant 0 : index
      %31 = vector.load %arg7[%c0_22, %c0_23] : memref<16x128xf32, #tpu.memory_space<vmem>>, vector<16x128xf32>
      tpu.vector_store %arg7[%c0_22, %c0_23], %30 {strides = array<i32>} : memref<16x128xf32, #tpu.memory_space<vmem>>, vector<16x128xf32>,
    } else {
    }
    return
  }
  func.func @transform_0(%arg0: i32, %arg1: i32) -> (i32, i32) {
    %c0_i32 = arith.constant 0 : i32
    %c0_i32_0 = arith.constant 0 : i32
    return %arg0, %c0_i32 : i32, i32
  }
  func.func @transform_1(%arg0: i32, %arg1: i32) -> (i32, i32) {
    %c0_i32 = arith.constant 0 : i32
    %c0_i32_0 = arith.constant 0 : i32
    return %c0_i32, %arg1 : i32, i32
  }
  func.func @transform_2(%arg0: i32, %arg1: i32) -> (i32, i32) {
    %c0_i32 = arith.constant 0 : i32
    %c0_i32_0 = arith.constant 0 : i32
    return %c0_i32, %arg1 : i32, i32
  }
  func.func @transform_3(%arg0: i32, %arg1: i32) -> (i32, i32) {
    %c0_i32 = arith.constant 0 : i32
    %c0_i32_0 = arith.constant 0 : i32
    return %arg1, %c0_i32 : i32, i32
  }
  func.func @transform_4(%arg0: i32, %arg1: i32) -> (i32, i32) {
    %c0_i32 = arith.constant 0 : i32
    %c0_i32_0 = arith.constant 0 : i32
    %c0_i32_1 = arith.constant 0 : i32
    return %c0_i32, %c0_i32_0 : i32, i32
  }
  func.func @transform_5(%arg0: i32, %arg1: i32) -> (i32, i32) {
    %c0_i32 = arith.constant 0 : i32
    %c0_i32_0 = arith.constant 0 : i32
    return %arg0, %c0_i32 : i32, i32
  }
}

</mosaic_0001>

<bundles_post_ra>
// kernel: tpu_custom_call.1
= control target key start
LH: loop header
LB: loop body
LE: loop exit
PB: predicated region body
PF: predicated region fallthrough
CT: control target
= control target key end

     0   :  { %10 = vsyncpa [#allocation3], 0  ;;  %s644_s0 = inlined_call_operand.hbm [shape: f32[16,128], index: 0, kind: input, shape index: {}]   ;;  %s645_s1 = inlined_call_operand.hbm [shape: bf16[128,128], index: 1, kind: input, shape index: {}]   ;;  %s646_s2 = inlined_call_operand.vmem [shape: f32[1,128], index: 2, kind: input, shape index: {}]   ;;  %s647_s3 = inlined_call_operand.hbm [shape: bf16[128,128], index: 3, kind: input, shape index: {}]   ;;  %s648_s4 = inlined_call_operand.vmem [shape: f32[1,128], index: 4, kind: input, shape index: {}]   ;;  %s649_s5 = inlined_call_operand.hbm [shape: f32[16,128], index: 5, kind: output, shape index: {}]  }
   0x1   :  { %11 = vsyncpa [#allocation6], 0  ;;  %s30_s20 = sshll.u32 %s645_s1, 4  ;;  %s31_s20 = int_to_ptr.hbm [resolvable:$true] %s30_s20 }
   0x2   :  { %12 = vsyncpa [#allocation4], 0  ;;  %s564_s21 = smov [#allocation5]   ;;  %s17_s25 = sshll.u32 %s644_s0, 4  ;;  %s18_s25 = int_to_ptr.hbm [resolvable:$true] %s17_s25 }
   0x3   :  { %s32_s22 = sshll.u32 %s564_s21, 4  ;;  %s565_s26 = smov 64   ;;  %s33_s22 = int_to_ptr.vmem [resolvable:$true] %s32_s22 }
   0x4   :  { %s566_s27 = smov 4   ;;  %s567_s28 = smov [#allocation2]  }
   0x5   :  { %38 = dma.hbm_to_vmem [thread:$0]  %s31_s20, 1024, %s33_s22, [#allocation6], %s565_s26, %s565_s26, %s566_s27  }
   0x6   :  { %s19_s29 = sshll.u32 %s567_s28, 4  ;;  %s568_s30 = smov 128   ;;  %s20_s29 = int_to_ptr.vmem [resolvable:$true] %s19_s29 }
   0x7   :  { %s569_s6 = smov 8   ;;  %s45_s8 = sshll.u32 %s647_s3, 4  ;;  %s46_s8 = int_to_ptr.hbm [resolvable:$true] %s45_s8 }
   0x8   :  { %25 = dma.hbm_to_vmem [thread:$0]  %s18_s25, 256, %s20_s29, [#allocation3], %s568_s30, %s568_s30, %s569_s6  }
   0x9   :  { %s570_s9 = smov [#allocation7]  }
   0xa   :  { %s47_s0 = sshll.u32 %s570_s9, 4  ;;  %s48_s0 = int_to_ptr.vmem [resolvable:$true] %s47_s0 }
   0xb   :  { %53 = dma.hbm_to_vmem [thread:$0]  %s46_s8, 1024, %s48_s0, [#allocation6], %s565_s26, %s565_s26, %s566_s27  }
   0xc   :  { %558 = dma.done.wait [#allocation3], 256  }
   0xd   :  { %559 = vsyncadd [#allocation3], 4294967040 }
   0xe   :  { %560 = dma.done.wait [#allocation6], 2048  }
   0xf   :  { %561 = vsyncadd [#allocation6], 4294965248  ;;  %v438_v0 = vld [vmem:[#allocation5 + $0x38] sm:$0xff]  ;;  %v437_v1 = vld [vmem:[#allocation5 + $0x30] sm:$0xff]  ;;  %s571_s12 = smov [#allocation8]   ;;  %s351_s16 = sshll.u32 %s649_s5, 4  ;;  %s352_s16 = int_to_ptr.hbm [resolvable:$true] %s351_s16 }
  0x10   :  { %145 = vmatpush.bf16.msra.mxu0 %v438_v0  ;;  %v436_v2 = vld [vmem:[#allocation5 + $0x28] sm:$0xff]  ;;  %v435_v3 = vld [vmem:[#allocation5 + $0x20] sm:$0xff]  ;;  %v434_v4 = vld [vmem:[#allocation5 + $0x18] sm:$0xff]  ;;  %s349_s13 = sshll.u32 %s571_s12, 4  ;;  %s350_s13 = int_to_ptr.vmem [resolvable:$true] %s349_s13 }
  0x11   :  { %v433_v5 = vld [vmem:[#allocation5 + $0x10] sm:$0xff]  ;;  %v432_v6 = vld [vmem:[#allocation5 + $0x8] sm:$0xff]  ;;  %v431_v7 = vld [vmem:[#allocation5] sm:$0xff] }
  0x12   :  { %v74_v8 = vld [vmem:[#allocation2] sm:$0xff]  ;;  %v75_v9 = vld [vmem:[#allocation2 + $0x8] sm:$0xff]  ;;  %v444_v18 = vld [vmem:[#allocation7 + $0x28] sm:$0xff] }
  0x13   :  { %v76_v10 = vpack.c.bf16 %v75_v9, %v74_v8  ;;  %v456_v11 = vld [vmem:[%s646_s2] ss:$0 sm:$0xff]  ;;  %v446_v12 = vld [vmem:[#allocation7 + $0x38] sm:$0xff]  ;;  %v443_v23 = vld [vmem:[#allocation7 + $0x20] sm:$0xff] }
  0x14   :  { %146 = vmatpush.bf16.msra.mxu0 %v437_v1  ;;  %314 = vmatpush.bf16.msra.mxu1 %v446_v12  ;;  %v445_v16 = vld [vmem:[#allocation7 + $0x30] sm:$0xff]  ;;  %v442_v29 = vld [vmem:[#allocation7 + $0x18] sm:$0xff]  ;;  %v440_v43 = vld [vmem:[#allocation7 + $0x8] sm:$0xff] }
  0x15   :  { %v441_v35 = vld [vmem:[#allocation7 + $0x10] sm:$0xff]  ;;  %v439_v50 = vld [vmem:[#allocation7] sm:$0xff] }
  0x18   :  { %147 = vmatpush.bf16.msra.mxu0 %v436_v2  ;;  %315 = vmatpush.bf16.msra.mxu1 %v445_v16 }
  0x1c   :  { %148 = vmatpush.bf16.msra.mxu0 %v435_v3  ;;  %316 = vmatpush.bf16.msra.mxu1 %v444_v18 }
  0x20   :  { %149 = vmatpush.bf16.msra.mxu0 %v434_v4  ;;  %317 = vmatpush.bf16.msra.mxu1 %v443_v23 }
  0x24   :  { %150 = vmatpush.bf16.msra.mxu0 %v433_v5  ;;  %318 = vmatpush.bf16.msra.mxu1 %v442_v29 }
  0x28   :  { %151 = vmatpush.bf16.msra.mxu0 %v432_v6  ;;  %319 = vmatpush.bf16.msra.mxu1 %v441_v35 }
  0x2c   :  { %152 = vmatpush.bf16.msra.mxu0 %v431_v7  ;;  %320 = vmatpush.bf16.msra.mxu1 %v440_v43 }
  0x2f   :  { %153 = vmatmul.bf16.vlgmr.msra.gmra.mxu0 %v76_v10 }
  0x30   :  { %321 = vmatpush.bf16.msra.mxu1 %v439_v50 }
  0xac   :  { %v154_v13 = vpop.f32.mrf.mxu0 }
  0xad   :  { %v617_v14 = vadd.f32 %v456_v11, %v154_v13 }
  0xaf   :  { %v620_v15 = vmul.f32 0.70710677, %v617_v14 }
  0xb1   :  { %v163_v17 = vmul.f32 %v620_v15, %v620_v15 }
  0xb3   :  { %v164_v19 = vmin.f32 %v163_v17, 16.0 }
  0xb4   :  { %v156_v20 = vpop.f32.mrf.mxu0 }
  0xb5   :  { %v165_v21 = vmul.f32 2.1237322e-06, %v164_v19  ;;  %v624_v22 = vadd.f32 %v456_v11, %v156_v20  ;;  %v176_v24 = vmul.f32 3.8918573e-05, %v164_v19 }
  0xb7   :  { %v166_v25 = vadd.f32 0.00028619796, %v165_v21  ;;  %v627_v26 = vmul.f32 0.70710677, %v624_v22  ;;  %v177_v27 = vadd.f32 0.001143296, %v176_v24 }
  0xb9   :  { %v203_v28 = vmul.f32 %v627_v26, %v627_v26  ;;  %v167_v30 = vmul.f32 %v166_v25, %v164_v19  ;;  %v178_v31 = vmul.f32 %v177_v27, %v164_v19 }
  0xbb   :  { %v204_v32 = vmin.f32 %v203_v28, 16.0  ;;  %v179_v33 = vadd.f32 0.014752088, %v178_v31  ;;  %v168_v37 = vadd.f32 0.0036580483, %v167_v30 }
  0xbd   :  { %v205_v34 = vmul.f32 2.1237322e-06, %v204_v32  ;;  %v216_v36 = vmul.f32 3.8918573e-05, %v204_v32  ;;  %v180_v38 = vmul.f32 %v179_v33, %v164_v19  ;;  %v169_v45 = vmul.f32 %v168_v37, %v164_v19 }
  0xbe   :  { %v160_v37 = vmul.f32 0.5, %v624_v22 }
  0xbf   :  { %v206_v39 = vadd.f32 0.00028619796, %v205_v34  ;;  %v217_v40 = vadd.f32 0.001143296, %v216_v36  ;;  %v181_v41 = vadd.f32 0.112945676, %v180_v38 }
  0xc0   :  { %v170_v52 = vadd.f32 0.05243302, %v169_v45  ;;  %v159_v36 = vmul.f32 0.5, %v617_v14 }
  0xc1   :  { %v207_v42 = vmul.f32 %v206_v39, %v204_v32  ;;  %v218_v44 = vmul.f32 %v217_v40, %v204_v32  ;;  %v182_v46 = vmul.f32 %v181_v41, %v164_v19 }
  0xc2   :  { %v171_v58 = vmul.f32 %v170_v52, %v164_v19 }
  0xc3   :  { %v208_v47 = vadd.f32 0.0036580483, %v207_v42  ;;  %v219_v48 = vadd.f32 0.014752088, %v218_v44  ;;  %v183_v49 = vadd.f32 0.4994258, %v182_v46 }
  0xc4   :  { %v172_v62 = vadd.f32 0.18741608, %v171_v58 }
  0xc5   :  { %v220_v51 = vmul.f32 %v219_v48, %v204_v32  ;;  %v184_v53 = vmul.f32 %v183_v49, %v164_v19  ;;  %v209_v54 = vmul.f32 %v208_v47, %v204_v32 }
  0xc6   :  { %v173_v3 = vmul.f32 %v172_v62, %v164_v19 }
  0xc7   :  { %v221_v55 = vadd.f32 0.112945676, %v220_v51  ;;  %v185_v56 = vadd.f32 1.0, %v184_v53  ;;  %v210_v59 = vadd.f32 0.05243302, %v209_v54 }
  0xc8   :  { %v174_v9 = vadd.f32 1.1283791, %v173_v3 }
  0xc9   :  { %v222_v57 = vmul.f32 %v221_v55, %v204_v32  ;;  %458 = vrcp.f32 %v185_v56  ;;  %v211_v63 = vmul.f32 %v210_v59, %v204_v32  ;;  %v197_v6 = vand.u32 2147483648, %v185_v56 }
  0xca   :  { %v195_v8 = vand.u32 2147483647, %v185_v56  ;;  %vm191_vm1 = vweird.f32 %v185_v56  ;;  %v175_v18 = vmul.f32 %v174_v9, %v620_v15 }
  0xcb   :  { %v223_v60 = vadd.f32 0.4994258, %v222_v57  ;;  %v212_v4 = vadd.f32 0.18741608, %v211_v63  ;;  %v198_v13 = vor.u32 1.1754944e-38, %v197_v6 }
  0xcc   :  { %vm196_vm3 = vcmp.eq.f32.partialorder %v195_v8, 8.507059e+37 }
  0xcd   :  { %v224_v61 = vmul.f32 %v223_v60, %v204_v32  ;;  %v213_v11 = vmul.f32 %v212_v4, %v204_v32 }
  0xcf   :  { %v225_v0 = vadd.f32 1.0, %v224_v61  ;;  %v459_v1 = vpop.eup %458  ;;  %v214_v21 = vadd.f32 1.1283791, %v213_v11 }
  0xd0   :  { %v187_v2 = vmul.f32 %v459_v1, %v185_v56  ;;  %vm192_vm0 = vweird.f32 %v459_v1 }
  0xd1   :  { %460 = vrcp.f32 %v225_v0  ;;  %vm193_vm2 = vmor %vm191_vm1, %vm192_vm0  ;;  %v237_v23 = vand.u32 2147483648, %v225_v0  ;;  %v235_v27 = vand.u32 2147483647, %v225_v0  ;;  %vm231_vm5 = vweird.f32 %v225_v0 }
  0xd2   :  { %v188_v5 = vsub.f32 1.0, %v187_v2  ;;  %v215_v30 = vmul.f32 %v214_v21, %v627_v26  ;;  %v457_v26 = vld [vmem:[%s648_s4] ss:$0 sm:$0xff] }
  0xd3   :  { %v238_v29 = vor.u32 1.1754944e-38, %v237_v23  ;;  %vm236_vm7 = vcmp.eq.f32.partialorder %v235_v27, 8.507059e+37 }
  0xd4   :  { %v189_v7 = vmul.f32 %v459_v1, %v188_v5 }
  0xd6   :  { %v190_v12 = vadd.f32 %v459_v1, %v189_v7 }
  0xd7   :  { %v461_v10 = vpop.eup %460 }
  0xd8   :  { %v227_v16 = vmul.f32 %v461_v10, %v225_v0  ;;  %v194_v17 = vsel %vm193_vm2, %v459_v1, %v190_v12  ;;  %vm232_vm4 = vweird.f32 %v461_v10 }
  0xd9   :  { %v199_v20 = vsel %vm196_vm3, %v198_v13, %v194_v17  ;;  %vm233_vm6 = vmor %vm231_vm5, %vm232_vm4 }
  0xda   :  { %v228_v19 = vsub.f32 1.0, %v227_v16  ;;  %v200_v24 = vmul.f32 %v199_v20, %v175_v18 }
  0xdc   :  { %v229_v25 = vmul.f32 %v461_v10, %v228_v19  ;;  %v397_v31 = vclamps-f32 %v200_v24, 1.0 }
  0xde   :  { %v230_v28 = vadd.f32 %v461_v10, %v229_v25  ;;  %v243_v35 = vadd.f32 1.0, %v397_v31 }
  0xe0   :  { %v234_v32 = vsel %vm233_vm6, %v461_v10, %v230_v28  ;;  %v245_v39 = vmul.f32 %v243_v35, %v159_v36 }
  0xe1   :  { %v239_v33 = vsel %vm236_vm7, %v238_v29, %v234_v32 }
  0xe2   :  { %v240_v34 = vmul.f32 %v239_v33, %v215_v30 }
  0xe4   :  { %v398_v15 = vclamps-f32 %v240_v34, 1.0 }
  0xe6   :  { %v244_v38 = vadd.f32 1.0, %v398_v15 }
  0xe8   :  { %v246_v40 = vmul.f32 %v244_v38, %v160_v37 }
  0xea   :  { %v249_v41 = vpack.c.bf16 %v246_v40, %v245_v39 }
  0xec   :  { %322 = vmatmul.bf16.vlgmr.msra.gmra.mxu1 %v249_v41 }
 0x169   :  { %v323_v42 = vpop.f32.mrf.mxu1 }
 0x16a   :  { %v341_v43 = vadd.f32 %v457_v26, %v323_v42 }
 0x16c   :  { %343 = vst [vmem:[#allocation8] sm:$0xff] %v341_v43 }
 0x171   :  { %v325_v44 = vpop.f32.mrf.mxu1 }
 0x172   :  { %v342_v14 = vadd.f32 %v457_v26, %v325_v44 }
 0x174   :  { %344 = vst [vmem:[#allocation8 + $0x8] sm:$0xff] %v342_v14 }
 0x175   :  { %357 = dma.vmem_to_hbm [thread:$0]  %s350_s13, 256, %s352_s16, [#allocation4], %s568_s30, %s568_s30, %s569_s6  }
 0x176   :  { %562 = dma.done.wait [#allocation4], 256  }
 0x177   :  { %563 = vsyncadd [#allocation4], 4294967040 }
 0x178   :  { %362 = vsyncpa [#allocation3], 1 }
 0x179   :  { %363 = vsyncpa [#allocation6], 1 }
 0x17a   :  { %364 = vsyncpa [#allocation4], 1 }

</bundles_post_ra>
